<compile_context>
chip_gen: v7x
topology: tpu7x:2x2x1
jax: 0.10.0
libtpu: 0.0.40
codegen_flags: <defaults>
</compile_context>

<pallas_src>
import jax
import jax.numpy as jnp
from jax.experimental import pallas as pl
from jax.experimental.pallas import tpu as pltpu


def _lower_bound_kernel(b_ref, x_ref, o_ref):
    # b_ref: (1,1) float32 scalar in SMEM.  Cast to the tile dtype (for bf16
    # inputs this rounds the bound to bf16, which can differ from a float32
    # comparison by one low-precision ULP right at the threshold).
    bound = b_ref[0, 0].astype(o_ref.dtype)
    o_ref[...] = jnp.maximum(x_ref[...], bound)


def _choose_2d_view(shape):
    """Pick a copy-free, lane-dense 2D view (rows, lane) of a contiguous tensor."""
    n = 1
    for d in shape:
        n *= int(d)
    # Fast path: a large multiple-of-128 lane width that divides the element
    # count -> fully unmasked lane-dense vector stores.
    for cand in (1024, 512, 256, 128):
        if n % cand == 0:
            return n // cand, cand
    # Fallback (n not divisible by 128): largest divisor of n <= 1024,
    # preferring multiples of 8.  Keeps stores mostly lane-dense (only the
    # final vreg per row is masked) instead of degrading to tiny lane widths.
    divisors = [d for d in range(1, min(n, 1024) + 1) if n % d == 0]
    mult8 = [d for d in divisors if d % 8 == 0]
    lane = mult8[-1] if mult8 else divisors[-1]
    return n // lane, lane


def _choose_tiles(rows, lane, itemsize, *, target_bytes=4 * 1024 * 1024):
    """Byte-sized (row, lane) tiles.  Returns (tile_r, tile_l, grid)."""
    sublane = max(8, 32 // itemsize)          # 8 for f32, 16 for bf16, 32 for int8
    total_bytes = rows * lane * itemsize

    # Lane tiling: keep the full lane extent when one sublane-group of it fits
    # the byte budget; otherwise tile lanes with a large multiple of 128 so a
    # huge odd last dim can't blow past VMEM.
    if lane <= 128 or lane * sublane * itemsize <= target_bytes:
        tile_l = lane
    else:
        tile_l = (target_bytes // (sublane * itemsize) // 128) * 128
        tile_l = max(128, min(tile_l, lane))

    # Row tiling sized by bytes, sublane-aligned (multiple of 8 when partial).
    tile_r = max(1, target_bytes // (tile_l * itemsize))
    tile_r = max(sublane, (tile_r // sublane) * sublane)

    if tile_r >= rows:
        tile_r = rows
        # v7x has 2 TensorCores; a single-block grid leaves one idle.  For
        # mid/large tensors that would otherwise be one block, split rows so
        # the "parallel" grid axis has >= 2 steps.
        if (tile_l == lane and total_bytes > (1 * 1024 * 1024)
                and rows >= 2 * sublane):
            half = -(-rows // 2)
            tile_r = ((half + sublane - 1) // sublane) * sublane
            tile_r = min(tile_r, rows)

    grid = (pl.cdiv(rows, tile_r), pl.cdiv(lane, tile_l))
    return tile_r, tile_l, grid


@jax.jit
def lower_bound_forward(x: jax.Array, bound) -> jax.Array:
    """Computes max(x, bound) elementwise with a Pallas TPU kernel.

    Works for any shape / float dtype; returns same shape and dtype as `x`.
    `bound` is a runtime scalar (no recompile per distinct bound value).
    """
    orig_shape = x.shape
    dtype = x.dtype
    itemsize = jnp.dtype(dtype).itemsize

    if x.size == 0:
        return x

    rows, lane = _choose_2d_view(orig_shape)
    x2 = x.reshape(rows, lane)                # layout-preserving, no HBM copy
    tile_r, tile_l, grid = _choose_tiles(rows, lane, itemsize)

    bound_arr = jnp.reshape(jnp.asarray(bound, dtype=jnp.float32), (1, 1))

    out2 = pl.pallas_call(
        _lower_bound_kernel,
        out_shape=jax.ShapeDtypeStruct((rows, lane), dtype),
        grid=grid,
        in_specs=[
            pl.BlockSpec(memory_space=pltpu.MemorySpace.SMEM),      # bound scalar
            pl.BlockSpec((tile_r, tile_l), lambda i, j: (i, j)),    # x tiles
        ],
        out_specs=pl.BlockSpec((tile_r, tile_l), lambda i, j: (i, j)),
        compiler_params=pltpu.CompilerParams(
            dimension_semantics=("parallel", "parallel"),
            vmem_limit_bytes=48 << 20,        # ~16 MiB live blocks fit on all gens
        ),
    )(bound_arr, x2)

    return out2.reshape(orig_shape)


if __name__ == "__main__":
    key = jax.random.PRNGKey(0)

    # Shapes consistent with the module's typical use (NCHW activations).
    B, C, H, W = 2, 4, 16, 16
    x = jax.random.normal(key, (B, C, H, W), dtype=jnp.float32)
    bound = 0.11  # scalar buffer set at module __init__

    y = jax.block_until_ready(lower_bound_forward(x, bound))
    y_ref = jnp.maximum(x, jnp.float32(bound))
    assert y.shape == x.shape and y.dtype == x.dtype
    assert jnp.allclose(y, y_ref), "mismatch with reference"

    # Ragged-shape robustness check (exercises the non-128-divisible fallback).
    x2 = jax.random.normal(jax.random.PRNGKey(1), (3, 5, 7, 11), dtype=jnp.float32)
    y2 = jax.block_until_ready(lower_bound_forward(x2, -0.25))
    assert jnp.allclose(y2, jnp.maximum(x2, jnp.float32(-0.25))), "ragged mismatch"

    print("KERNEL_OK")
</pallas_src>

<mosaic_0001>
module attributes {stable_mosaic.version = 11 : i64} {
  func.func @_lower_bound_kernel(%arg0: i32, %arg1: i32, %arg2: memref<1x1xf32, #tpu.memory_space<smem>>, %arg3: memref<2x1024xf32, #tpu.memory_space<vmem>>, %arg4: memref<2x1024xf32, #tpu.memory_space<vmem>>) attributes {dimension_semantics = [#tpu.dimension_semantics<parallel>, #tpu.dimension_semantics<parallel>], iteration_bounds = array<i64: 1, 1>, scalar_prefetch = 0 : i64, scratch_operands = 0 : i64, tpu.core_type = #tpu.core_type<tc>, window_params = [{transform_indices = @transform_0, window_bounds = array<i64: 1, 1>}, {transform_indices = @transform_1, window_bounds = array<i64: 2, 1024>}, {transform_indices = @transform_2, window_bounds = array<i64: 2, 1024>}]} {
    %c0 = arith.constant 0 : index
    %c0_0 = arith.constant 0 : index
    %0 = memref.load %arg2[%c0, %c0_0] : memref<1x1xf32, #tpu.memory_space<smem>>
    %c0_1 = arith.constant 0 : index
    %c0_2 = arith.constant 0 : index
    %1 = vector.load %arg3[%c0_1, %c0_2] : memref<2x1024xf32, #tpu.memory_space<vmem>>, vector<2x1024xf32>
    %2 = vector.broadcast %0 : f32 to vector<2x1024xf32>
    %3 = arith.maximumf %1, %2 : vector<2x1024xf32>
    %c0_3 = arith.constant 0 : index
    %c0_4 = arith.constant 0 : index
    %4 = vector.load %arg4[%c0_3, %c0_4] : memref<2x1024xf32, #tpu.memory_space<vmem>>, vector<2x1024xf32>
    tpu.vector_store %arg4[%c0_3, %c0_4], %3 {strides = array<i32>} : memref<2x1024xf32, #tpu.memory_space<vmem>>, vector<2x1024xf32>,
    return
  }
  func.func @transform_0(%arg0: i32, %arg1: i32) -> (i32, i32) {
    %c0_i32 = arith.constant 0 : i32
    %c0_i32_0 = arith.constant 0 : i32
    %c0_i32_1 = arith.constant 0 : i32
    return %c0_i32, %c0_i32_0 : i32, i32
  }
  func.func @transform_1(%arg0: i32, %arg1: i32) -> (i32, i32) {
    %c0_i32 = arith.constant 0 : i32
    return %arg0, %arg1 : i32, i32
  }
  func.func @transform_2(%arg0: i32, %arg1: i32) -> (i32, i32) {
    %c0_i32 = arith.constant 0 : i32
    return %arg0, %arg1 : i32, i32
  }
}

</mosaic_0001>

<bundles_post_ra>
// kernel: lower_bound_forward.1
= control target key start
LH: loop header
LB: loop body
LE: loop exit
PB: predicated region body
PF: predicated region fallthrough
CT: control target
= control target key end

     0   :  { %s54_s0 = inlined_call_operand.<no memory space> [shape: f32[1,1], index: 0, kind: input, shape index: {}]   ;;  %s55_s1 = inlined_call_operand.vmem [shape: f32[2,1024], index: 1, kind: input, shape index: {}]   ;;  %s56_s2 = inlined_call_operand.vmem [shape: f32[2,1024], index: 2, kind: output, shape index: {}]  }
   0x1   :  { %v13_v0 = vld [vmem:[%s55_s1] sm:$0xff]  ;;  %v15_v1 = vstv %s54_s0  ;;  %v14_v2 = vld [vmem:[%s55_s1 + $0x8] sm:$0xff] }
   0x2   :  { %v16_v3 = vmax.f32 %v13_v0, %v15_v1  ;;  %v17_v4 = vmax.f32 %v14_v2, %v15_v1 }
   0x4   :  { %18 = vst [vmem:[%s56_s2] sm:$0xff] %v16_v3  ;;  %19 = vst [vmem:[%s56_s2 + $0x8] sm:$0xff] %v17_v4 }

</bundles_post_ra>
